<compile_context>
chip_gen: v6e
topology: v6e:2x2x1
jax: 0.10.0
libtpu: 0.0.40
codegen_flags: <defaults>
</compile_context>

<pallas_src>
import functools

import jax
import jax.numpy as jnp
from jax.experimental import pallas as pl
from jax.experimental.pallas import tpu as pltpu


def _round_up(x, m):
    return ((x + m - 1) // m) * m


def _decoder_linear_kernel(x_ref, w_ref, b_ref, o_ref):
    # x_ref: (TM, D) bf16, w_ref: (D, Cp) bf16, b_ref: (1, Cp) f32, o_ref: (TM, Cp)
    acc = jnp.dot(x_ref[...], w_ref[...], preferred_element_type=jnp.float32)
    acc = acc + b_ref[...]                       # f32 bias broadcast over rows
    o_ref[...] = acc.astype(o_ref.dtype)


@functools.partial(jax.jit, static_argnames=("H", "W", "patch_size"))
def decoder_linear_forward(x, weight, bias, H, W, patch_size):
    """x: (B, N, D); weight: (C, D) (torch nn.Linear layout); bias: (C,).

    Returns (B, C, H//patch_size, W//patch_size), matching the PyTorch module.
    """
    B, N, D = x.shape
    C = weight.shape[0]
    gh, gw = H // patch_size, W // patch_size
    assert N == gh * gw, "token count must equal (H/ps)*(W/ps)"

    out_dtype = x.dtype
    out_bytes = jnp.dtype(out_dtype).itemsize

    M = B * N
    # Token tile: multiple of 16 (bf16 sublane packing), capped at 1024 so the
    # per-step footprint stays small on v7x's 64 MiB VMEM while still moving
    # multiple MiB per grid step on v5e/v6e.
    TM = min(1024, _round_up(M, 16))
    M_pad = _round_up(M, TM)           # no ragged tail tile
    C_pad = _round_up(C, 128)          # lane-dense output stores / MXU-aligned N

    # bf16 inputs (HBM bytes / MXU); accumulation stays f32 inside the kernel.
    x2d = x.reshape(M, D).astype(jnp.bfloat16)
    if M_pad != M:
        x2d = jnp.pad(x2d, ((0, M_pad - M), (0, 0)))
    w_t = weight.astype(jnp.bfloat16).T                        # (D, C)
    if C_pad != C:
        w_t = jnp.pad(w_t, ((0, 0), (0, C_pad - C)))
        b2d = jnp.pad(bias.astype(jnp.float32), (0, C_pad - C)).reshape(1, C_pad)
    else:
        b2d = bias.astype(jnp.float32).reshape(1, C_pad)

    grid_m = M_pad // TM

    # Per-step VMEM: double-buffered x tile + resident W/bias + double-buffered
    # output tile.  Set an explicit scoped-VMEM limit with headroom instead of
    # relying on generation-specific defaults.
    bytes_per_step = (2 * TM * D * 2            # x tiles (bf16, 2 buffers)
                      + 2 * D * C_pad * 2       # weight (bf16)
                      + 2 * 1 * C_pad * 4       # bias (f32)
                      + 2 * TM * C_pad * out_bytes)
    vmem_limit = int(min(max(2 * bytes_per_step, 16 * 1024 * 1024),
                         64 * 1024 * 1024))

    cost = pl.CostEstimate(
        flops=2 * M_pad * D * C_pad,
        transcendentals=0,
        bytes_accessed=(M_pad * D * 2 + D * C_pad * 2
                        + M_pad * C_pad * out_bytes),
    )

    out2d = pl.pallas_call(
        _decoder_linear_kernel,
        out_shape=jax.ShapeDtypeStruct((M_pad, C_pad), out_dtype),
        grid_spec=pltpu.PrefetchScalarGridSpec(
            num_scalar_prefetch=0,
            grid=(grid_m,),
            in_specs=[
                pl.BlockSpec((TM, D), lambda i: (i, 0)),      # streamed x tile
                pl.BlockSpec((D, C_pad), lambda i: (0, 0)),   # resident weight
                pl.BlockSpec((1, C_pad), lambda i: (0, 0)),   # resident bias
            ],
            out_specs=pl.BlockSpec((TM, C_pad), lambda i: (i, 0)),
        ),
        compiler_params=pltpu.CompilerParams(
            dimension_semantics=("parallel",),   # shards M tiles across v7x's 2 TCs
            vmem_limit_bytes=vmem_limit,
        ),
        cost_estimate=cost,
    )(x2d, w_t, b2d)

    # Drop padding, then layout glue: (M, C) -> (B, gh, gw, C) -> NCHW.
    out2d = out2d[:M, :C]
    out = out2d.reshape(B, gh, gw, C)
    return jnp.transpose(out, (0, 3, 1, 2))


if __name__ == "__main__":
    # Small, forward-consistent shapes: B=2, H=W=16, patch_size=4 -> N=16 tokens.
    B, H, W, patch_size = 2, 16, 16, 4
    in_size, n_classes = 32, 8
    N = (H // patch_size) * (W // patch_size)

    key = jax.random.PRNGKey(0)
    kx, kw, kb = jax.random.split(key, 3)
    x = jax.random.normal(kx, (B, N, in_size), dtype=jnp.float32)
    # Deterministic synthetic nn.Linear params (torch layout: weight (C, D), bias (C,)).
    weight = jax.random.normal(kw, (n_classes, in_size), dtype=jnp.float32) * 0.02
    bias = jax.random.normal(kb, (n_classes,), dtype=jnp.float32) * 0.01

    out = decoder_linear_forward(x, weight, bias, H, W, patch_size)
    out = jax.block_until_ready(out)

    # Reference check in plain JAX (same math as the PyTorch module, f32).
    ref = jnp.einsum("bnd,cd->bnc", x, weight) + bias
    ref = jnp.transpose(ref.reshape(B, H // patch_size, W // patch_size, n_classes),
                        (0, 3, 1, 2))
    assert out.shape == (B, n_classes, H // patch_size, W // patch_size)
    # bf16 inputs with f32 accumulation -> slightly looser tolerance than pure f32.
    assert jnp.allclose(out, ref, atol=1e-2, rtol=1e-2)

    print("KERNEL_OK")
</pallas_src>

<mosaic_0001>
module attributes {stable_mosaic.version = 11 : i64} {
  func.func @_decoder_linear_kernel(%arg0: i32, %arg1: memref<32x32xbf16, #tpu.memory_space<vmem>>, %arg2: memref<32x128xbf16, #tpu.memory_space<vmem>>, %arg3: memref<1x128xf32, #tpu.memory_space<vmem>>, %arg4: memref<32x128xf32, #tpu.memory_space<vmem>>) attributes {dimension_semantics = [#tpu.dimension_semantics<parallel>], iteration_bounds = array<i64: 1>, scalar_prefetch = 0 : i64, scratch_operands = 0 : i64, tpu.core_type = #tpu.core_type<tc>, window_params = [{transform_indices = @transform_0, window_bounds = array<i64: 32, 32>}, {pipeline_mode = #tpu.pipeline_mode<synchronous>, transform_indices = @transform_1, window_bounds = array<i64: 32, 128>}, {pipeline_mode = #tpu.pipeline_mode<synchronous>, transform_indices = @transform_2, window_bounds = array<i64: 1, 128>}, {transform_indices = @transform_3, window_bounds = array<i64: 32, 128>}]} {
    %c0 = arith.constant 0 : index
    %c0_0 = arith.constant 0 : index
    %0 = vector.load %arg1[%c0, %c0_0] : memref<32x32xbf16, #tpu.memory_space<vmem>>, vector<32x32xbf16>
    %c0_1 = arith.constant 0 : index
    %c0_2 = arith.constant 0 : index
    %1 = vector.load %arg2[%c0_1, %c0_2] : memref<32x128xbf16, #tpu.memory_space<vmem>>, vector<32x128xbf16>
    %cst = arith.constant dense<0.000000e+00> : vector<32x128xf32>
    %2 = tpu.matmul %0, %1, %cst {dimension_numbers = #tpu.dot_dimension_numbers<[1], [0], [0], [1], [0, 0, 1, 1], [], []>} : vector<32x32xbf16>, vector<32x128xbf16>, vector<32x128xf32> -> vector<32x128xf32>
    %c0_3 = arith.constant 0 : index
    %c0_4 = arith.constant 0 : index
    %3 = vector.load %arg3[%c0_3, %c0_4] : memref<1x128xf32, #tpu.memory_space<vmem>>, vector<1x128xf32>
    %4 = vector.broadcast %3 : vector<1x128xf32> to vector<32x128xf32>
    %5 = arith.addf %2, %4 : vector<32x128xf32>
    %c0_5 = arith.constant 0 : index
    %c0_6 = arith.constant 0 : index
    %6 = vector.load %arg4[%c0_5, %c0_6] : memref<32x128xf32, #tpu.memory_space<vmem>>, vector<32x128xf32>
    tpu.vector_store %arg4[%c0_5, %c0_6], %5 {strides = array<i32>} : memref<32x128xf32, #tpu.memory_space<vmem>>, vector<32x128xf32>,
    return
  }
  func.func @transform_0(%arg0: i32) -> (i32, i32) {
    %c0_i32 = arith.constant 0 : i32
    %c0_i32_0 = arith.constant 0 : i32
    return %arg0, %c0_i32 : i32, i32
  }
  func.func @transform_1(%arg0: i32) -> (i32, i32) {
    %c0_i32 = arith.constant 0 : i32
    %c0_i32_0 = arith.constant 0 : i32
    %c0_i32_1 = arith.constant 0 : i32
    return %c0_i32, %c0_i32_0 : i32, i32
  }
  func.func @transform_2(%arg0: i32) -> (i32, i32) {
    %c0_i32 = arith.constant 0 : i32
    %c0_i32_0 = arith.constant 0 : i32
    %c0_i32_1 = arith.constant 0 : i32
    return %c0_i32, %c0_i32_0 : i32, i32
  }
  func.func @transform_3(%arg0: i32) -> (i32, i32) {
    %c0_i32 = arith.constant 0 : i32
    %c0_i32_0 = arith.constant 0 : i32
    return %arg0, %c0_i32 : i32, i32
  }
}

</mosaic_0001>

<bundles_post_ra>
// kernel: decoder_linear_forward.1
= control target key start
LH: loop header
LB: loop body
LE: loop exit
PB: predicated region body
PF: predicated region fallthrough
CT: control target
= control target key end

     0   :  { %vm53_vm0 = vcmask 261120   ;;  %s218_s0 = inlined_call_operand.vmem [shape: bf16[32,32], index: 0, kind: input, shape index: {}]   ;;  %s219_s1 = inlined_call_operand.vmem [shape: bf16[32,128], index: 1, kind: input, shape index: {}]   ;;  %s220_s2 = inlined_call_operand.vmem [shape: f32[1,128], index: 2, kind: input, shape index: {}]   ;;  %s221_s3 = inlined_call_operand.hbm [shape: f32[32,128], index: 3, kind: output, shape index: {}]  }
   0x1   :  { %v151_v0 = vld [vmem:[%s219_s1 + $0x8] sm:$0xff]   ;;  %v152_v1 = vld [vmem:[%s219_s1] sm:$0xff]  }
   0x2   :  { %140 = vmatprep.subr.bf16.mxu0 %v151_v0  ;;  %v153_v2 = vld [vmem:[%s218_s0] sm:$0xff]  }
   0x3   :  { %141 = vmatpush3.bf16.msra.mxu0 %v151_v0  ;;  %144 = vmatprep.mubr.msk.bf16.mxu0 %vm53_vm0, %v153_v2 }
   0x4   :  { %142 = vmatprep.subr.bf16.mxu0 %v152_v1 }
   0x5   :  { %8 = vsyncpa [#allocation3], 0  ;;  %v154_v3 = vld [vmem:[%s218_s0 + $0x8] sm:$0xff]   ;;  %v129_v4 = vld [vmem:[%s220_s2] ss:$0 sm:$0xff]  ;;  %s177_s1 = smov [#allocation2]  }
   0x6   :  { %s118_s22 = sshll.u32 %s177_s1, 4  ;;  %s119_s22 = int_to_ptr.vmem [resolvable:$true] %s118_s22 }
   0x7   :  { %143 = vmatpush3.bf16.msra.mxu0 %v152_v1  ;;  %s155_s0 = scalar_lea.vmem %s119_s22, 512  ;;  %p160_p1 = scmp.lt.s32.totalorder %s119_s22, %s119_s22 }
   0x8   :  { %p156_p0 = scmp.ne.s32.totalorder %s119_s22, %s155_s0  ;;  %p161_p2 = scmp.lt.s32.totalorder %s155_s0, %s155_s0 }
   0xa   :  { %145 = vmatmul.mubr.msk.bf16.vlgmr.msra.gmra.mxu0 %vm53_vm0, %v154_v3  ;;  %p162_p3 = por %p161_p2, %p160_p1 }
   0xc   :  { %p163_p4 = pnand %p162_p3, %p156_p0 }
  0xca   :  { %v146_v5 = vpop.f32.mrf.mxu0 }
  0xcb   :  { %v103_v6 = vadd.f32 %v146_v5, %v129_v4 }
  0xcc   :  { %v94_v7 = vpop.f32.mrf.mxu0 }
  0xcd   :  { %111 = vst [vmem:[#allocation2 + $0x10] sm:$0xff] %v103_v6  ;;  %v95_v8 = vadd.f32 %v129_v4, %v94_v7 }
  0xce   :  { %v147_v9 = vpop.f32.mrf.mxu0 }
  0xcf   :  { %109 = vst [vmem:[#allocation2] sm:$0xff] %v95_v8  ;;  %v106_v10 = vadd.f32 %v147_v9, %v129_v4 }
  0xd0   :  { %v97_v11 = vpop.f32.mrf.mxu0 }
  0xd1   :  { %112 = vst [vmem:[#allocation2 + $0x18] sm:$0xff] %v106_v10  ;;  %v98_v12 = vadd.f32 %v129_v4, %v97_v11 }
  0xd3   :  { %110 = vst [vmem:[#allocation2 + $0x8] sm:$0xff] %v98_v12 }
  0xd4   :  { %166 = shalt.err (!%p163_p4)
}
  0xd5   :  { %s178_s2 = smov 128   ;;  %s179_s23 = smov 8  }
  0xd6   :  { %124 = dma.vmem_to_hbm [thread:$0]  %s119_s22, 512, %s221_s3, [#allocation3], %s178_s2, %s178_s2, %s179_s23  }
  0xd7   :  { %175 = dma.done.wait [#allocation3], 512  }
  0xd8   :  { %176 = vsyncadd [#allocation3], 4294966784 }
  0xd9   :  { %128 = vsyncpa [#allocation3], 1 }

</bundles_post_ra>
